<compile_context>
chip_gen: v6e
topology: v6e:2x2x1
jax: 0.10.0
libtpu: 0.0.40
codegen_flags: <defaults>
</compile_context>

<pallas_src>
import functools
import math

import jax
import jax.numpy as jnp
import numpy as np
from jax.experimental import pallas as pl
from jax.experimental.pallas import tpu as pltpu


# ----------------------------------------------------------------------------
# Kernels
# ----------------------------------------------------------------------------
def _alias_noop_kernel(x_hbm_ref, o_hbm_ref):
    # TODO(synk): BaseAggregator.forward is `pass` in the reference module
    # (abstract base class) — there is no aggregation math to implement.
    # The output HBM buffer IS the input HBM buffer (input_output_aliases),
    # so there is nothing to compute and nothing to move.
    del x_hbm_ref, o_hbm_ref


def _copy_kernel(x_ref, o_ref):
    # Pure ref-to-ref assignment: no extra VPU work, so even v5e's single
    # vector-store slot stays behind the HBM DMA bound.
    o_ref[...] = x_ref[...]


# ----------------------------------------------------------------------------
# Zero-traffic aliased identity (primary path; requires a donated input)
# ----------------------------------------------------------------------------
def _pallas_identity_alias(x: jax.Array) -> jax.Array:
    return pl.pallas_call(
        _alias_noop_kernel,
        out_shape=jax.ShapeDtypeStruct(x.shape, x.dtype),
        in_specs=[pl.BlockSpec(memory_space=pl.ANY)],
        out_specs=pl.BlockSpec(memory_space=pl.ANY),
        input_output_aliases={0: 0},
    )(x)


@functools.partial(jax.jit, donate_argnums=0)
def _identity_donated(x: jax.Array) -> jax.Array:
    return _pallas_identity_alias(x)


# ----------------------------------------------------------------------------
# Streaming-copy identity (secondary path; caller keeps its input alive)
# ----------------------------------------------------------------------------
_BLOCK_BUDGET_BYTES = 1 << 20  # ~1 MiB blocks -> many steps, ~4 MiB live VMEM
_LANE_CANDIDATES = (32768, 16384, 8192, 4096, 2048, 1024, 512, 256, 128)
_MIN_STEPS_FOR_PIPELINE = 16   # steady-state DMA overlap + v7x megacore balance


def _packed_sublane(dtype) -> int:
    """Rows per vreg tile for this dtype (8 f32, 16 bf16, 32 int8/fp8)."""
    itemsize = jnp.dtype(dtype).itemsize
    return max(8, 32 // max(1, itemsize))


def _pallas_copy_2d(x2d: jax.Array) -> jax.Array:
    rows, cols = x2d.shape
    itemsize = jnp.dtype(x2d.dtype).itemsize
    sub = _packed_sublane(x2d.dtype)

    # Guard: if even a (sub, cols) block exceeds the budget (huge H*W that is
    # not 128-divisible), block the column axis too (multiples of 128).
    if cols * itemsize * sub > _BLOCK_BUDGET_BYTES and cols > 128:
        col_block = max(128, (_BLOCK_BUDGET_BYTES // (itemsize * sub)) // 128 * 128)
        col_block = min(col_block, cols)
    else:
        col_block = cols

    if rows <= sub:
        block_rows = rows  # block equals full dim: always legal
    else:
        rows_by_budget = _BLOCK_BUDGET_BYTES // max(1, col_block * itemsize)
        block_rows = min(rows, max(sub, (rows_by_budget // sub) * sub))
        block_rows = max(sub, (block_rows // sub) * sub)

        # Enough steps for steady-state read/write overlap and a balanced
        # split across v7x's two TensorCores (harmless on v5e/v6e).
        total_bytes = rows * cols * itemsize
        if total_bytes > (4 << 20):
            while (pl.cdiv(rows, block_rows) * pl.cdiv(cols, col_block)
                   < _MIN_STEPS_FOR_PIPELINE) and block_rows > sub:
                block_rows = max(sub, (block_rows // 2 // sub) * sub)

    grid_rows = pl.cdiv(rows, block_rows)
    grid_cols = pl.cdiv(cols, col_block)

    if grid_cols == 1:
        grid = (grid_rows,)
        in_specs = [pl.BlockSpec((block_rows, cols), lambda i: (i, 0))]
        out_specs = pl.BlockSpec((block_rows, cols), lambda i: (i, 0))
        dims = ("parallel",)
    else:
        grid = (grid_rows, grid_cols)
        in_specs = [pl.BlockSpec((block_rows, col_block), lambda i, j: (i, j))]
        out_specs = pl.BlockSpec((block_rows, col_block), lambda i, j: (i, j))
        dims = ("parallel", "parallel")

    return pl.pallas_call(
        _copy_kernel,
        out_shape=jax.ShapeDtypeStruct((rows, cols), x2d.dtype),
        grid_spec=pltpu.PrefetchScalarGridSpec(
            num_scalar_prefetch=0,
            grid=grid,
            in_specs=in_specs,
            out_specs=out_specs,
        ),
        compiler_params=pltpu.CompilerParams(dimension_semantics=dims),
    )(x2d)


@jax.jit
def _identity_copy(x: jax.Array) -> jax.Array:
    shape = x.shape
    total = math.prod(shape) if shape else 1
    sub = _packed_sublane(x.dtype)

    # Lane-dense flatten: identity ignores dimension meaning, so present the
    # data as (total // L, L) with L a large multiple of 128 whenever possible
    # (unmasked vst, full-width DMA on every generation).
    two_d = None
    for lane in _LANE_CANDIDATES:
        if total % lane == 0:
            r = total // lane
            if two_d is None or r >= sub:
                two_d = (r, lane)
            if r >= sub:
                break
    if two_d is None:
        # Not 128-divisible: fall back to a [prod(leading), H*W]-style view.
        if len(shape) >= 2:
            lead = 1
            for d in shape[:-2]:
                lead *= d
            two_d = (lead, shape[-2] * shape[-1])
        else:
            two_d = (1, total)

    y2d = _pallas_copy_2d(x.reshape(two_d))
    return y2d.reshape(shape)


# ----------------------------------------------------------------------------
# Public forward
# ----------------------------------------------------------------------------
def base_aggregator_forward(x: jax.Array, *, donate: bool = True) -> jax.Array:
    """BaseAggregator.forward — a no-op on the input features.

    donate=True  : zero-HBM-traffic path. The Pallas output buffer is the
                   (donated) input buffer; the kernel body moves nothing.
                   The caller must not reuse `x` afterwards.
    donate=False : streaming-copy path for callers that must keep `x` alive
                   (lane-dense ~1 MiB blocks, >=16 parallel grid steps on
                   large inputs).
    """
    if donate:
        return _identity_donated(x)
    return _identity_copy(x)


if __name__ == "__main__":
    key = jax.random.PRNGKey(0)
    # Small representative NCHW feature map (the base class is parameter-free).
    x = jax.random.normal(key, (2, 4, 16, 16), dtype=jnp.float32)
    x_host = np.asarray(x)  # host reference copy — x itself is donated below

    # Primary: zero-traffic aliased identity (donates x).
    y = base_aggregator_forward(x)
    jax.block_until_ready(y)
    assert y.shape == (2, 4, 16, 16) and y.dtype == jnp.float32
    assert np.allclose(np.asarray(y), x_host), "identity (aliased) mismatch"

    # Secondary: streaming-copy identity (caller keeps its input alive).
    x2 = jnp.asarray(x_host)
    y2 = base_aggregator_forward(x2, donate=False)
    jax.block_until_ready(y2)
    assert y2.shape == x2.shape and y2.dtype == x2.dtype
    assert np.allclose(np.asarray(y2), x_host), "identity (copy) mismatch"

    print("KERNEL_OK")
</pallas_src>

<mosaic_0001>
module attributes {stable_mosaic.version = 11 : i64} {
  func.func @_alias_noop_kernel(%arg0: memref<2x4x16x16xf32, #tpu.memory_space<any>>, %arg1: memref<2x4x16x16xf32, #tpu.memory_space<any>>) attributes {dimension_semantics = [], scalar_prefetch = 0 : i64, scratch_operands = 0 : i64, tpu.core_type = #tpu.core_type<tc>} {
    return
  }
}

</mosaic_0001>

<bundles_post_ra>
// kernel: _identity_donated.1
= control target key start
LH: loop header
LB: loop body
LE: loop exit
PB: predicated region body
PF: predicated region fallthrough
CT: control target
= control target key end

     0   :  { %s16_s0 = inlined_call_operand.hbm [shape: f32[2,4,16,16], index: 0, kind: input, shape index: {}, may-alias: {0,1}]   ;;  %s17_s1 = inlined_call_operand.hbm [shape: f32[2,4,16,16], index: 1, kind: output, shape index: {}, may-alias: {0,1}]  }

</bundles_post_ra>
